<compile_context>
chip_gen: v6e
topology: v6e:2x2x1
jax: 0.10.0
libtpu: 0.0.40
codegen_flags: <defaults>
</compile_context>

<pallas_src>
import jax
import jax.numpy as jnp
from jax.experimental import pallas as pl
from jax.experimental.pallas import tpu as pltpu

_EPS = 1e-07
_COLS = 1024        # lane-dense last dim (multiple of 128)
_ROW_TILE = 512     # 512 x 1024 x 4B = 2 MiB per f32 input tile


def _bce_kernel(pred_ref, target_ref, out_ref):
    # Upcast inside the kernel: HBM traffic stays in the (possibly narrow)
    # input dtype, math is done in f32 to match the reference numerics.
    p = jax.nn.sigmoid(pred_ref[...].astype(jnp.float32))
    t = jax.nn.sigmoid(target_ref[...].astype(jnp.float32))
    loss = t * jnp.log(p + _EPS) + (1.0 - t) * jnp.log(1.0 - p + _EPS)
    out_ref[...] = (-loss).astype(out_ref.dtype)


def mybceloss(pred, target):
    """Elementwise:  -(sigmoid(t)*log(sigmoid(p)+1e-7)
                       + (1-sigmoid(t))*log(1-sigmoid(p)+1e-7))."""
    assert pred.shape == target.shape
    orig_shape = pred.shape
    out_dtype = pred.dtype

    n = 1
    for d in orig_shape:
        n *= d

    cols = _COLS
    rows = pl.cdiv(n, cols)          # python ints -> python int
    n_pad = rows * cols

    pred_f = jnp.ravel(pred)
    target_f = jnp.ravel(target)
    if n_pad != n:
        # Only the tail of the flat array is padded (< 1024 elements); the
        # ragged last row-tile is handled by Pallas' masked block writes.
        pred_f = jnp.pad(pred_f, (0, n_pad - n))
        target_f = jnp.pad(target_f, (0, n_pad - n))

    pred2d = pred_f.reshape(rows, cols)
    target2d = target_f.reshape(rows, cols)

    # Row tile: full array if it fits (any row count is legal when the block
    # equals the full dim), otherwise 512 (multiple of 8 sublanes).  The last
    # grid step may be partial; Pallas masks its output stores.
    rt = rows if rows <= _ROW_TILE else _ROW_TILE
    grid = (pl.cdiv(rows, rt),)

    out2d = pl.pallas_call(
        _bce_kernel,
        out_shape=jax.ShapeDtypeStruct((rows, cols), out_dtype),
        grid_spec=pltpu.PrefetchScalarGridSpec(
            num_scalar_prefetch=0,
            grid=grid,
            in_specs=[
                pl.BlockSpec((rt, cols), lambda i: (i, 0)),
                pl.BlockSpec((rt, cols), lambda i: (i, 0)),
            ],
            out_specs=pl.BlockSpec((rt, cols), lambda i: (i, 0)),
        ),
        compiler_params=pltpu.CompilerParams(
            dimension_semantics=("parallel",),
            vmem_limit_bytes=32 * 1024 * 1024,
        ),
    )(pred2d, target2d)

    if n_pad == n:
        out = out2d.reshape(orig_shape)
    else:
        out = out2d.reshape(-1)[:n].reshape(orig_shape)
    return out


def _reference(pred, target):
    p = jax.nn.sigmoid(pred.astype(jnp.float32))
    t = jax.nn.sigmoid(target.astype(jnp.float32))
    loss = t * jnp.log(p + _EPS) + (1.0 - t) * jnp.log(1.0 - p + _EPS)
    return (-loss).astype(pred.dtype)


if __name__ == "__main__":
    key = jax.random.PRNGKey(0)
    k1, k2, k3, k4 = jax.random.split(key, 4)

    # Small NCHW-shaped inputs, consistent with a typical segmentation loss.
    pred = jax.random.normal(k1, (2, 4, 16, 16), dtype=jnp.float32)
    target = jax.random.normal(k2, (2, 4, 16, 16), dtype=jnp.float32)

    out = mybceloss(pred, target)
    out = jax.block_until_ready(out)
    ref = _reference(pred, target)
    assert out.shape == pred.shape and out.dtype == pred.dtype
    assert jnp.allclose(out, ref, atol=1e-5, rtol=1e-5), "mismatch vs reference"

    # Second case: awkward size exercising the pad / ragged-tile path.
    pred2 = jax.random.normal(k3, (3, 5, 17, 19), dtype=jnp.float32)
    target2 = jax.random.normal(k4, (3, 5, 17, 19), dtype=jnp.float32)
    out2 = jax.block_until_ready(mybceloss(pred2, target2))
    ref2 = _reference(pred2, target2)
    assert jnp.allclose(out2, ref2, atol=1e-5, rtol=1e-5), "mismatch (padded case)"

    print("KERNEL_OK")
</pallas_src>

<mosaic_0001>
module attributes {stable_mosaic.version = 11 : i64} {
  func.func @_bce_kernel(%arg0: i32, %arg1: memref<2x1024xf32, #tpu.memory_space<vmem>>, %arg2: memref<2x1024xf32, #tpu.memory_space<vmem>>, %arg3: memref<2x1024xf32, #tpu.memory_space<vmem>>) attributes {dimension_semantics = [#tpu.dimension_semantics<parallel>], iteration_bounds = array<i64: 1>, scalar_prefetch = 0 : i64, scratch_operands = 0 : i64, tpu.core_type = #tpu.core_type<tc>, window_params = [{transform_indices = @transform_0, window_bounds = array<i64: 2, 1024>}, {transform_indices = @transform_1, window_bounds = array<i64: 2, 1024>}, {transform_indices = @transform_2, window_bounds = array<i64: 2, 1024>}]} {
    %c0 = arith.constant 0 : index
    %c0_0 = arith.constant 0 : index
    %0 = vector.load %arg1[%c0, %c0_0] : memref<2x1024xf32, #tpu.memory_space<vmem>>, vector<2x1024xf32>
    %1 = arith.negf %0 : vector<2x1024xf32>
    %2 = math.exp %1 : vector<2x1024xf32>
    %cst = arith.constant 1.000000e+00 : f32
    %3 = vector.broadcast %cst : f32 to vector<2x1024xf32>
    %4 = arith.addf %3, %2 : vector<2x1024xf32>
    %5 = arith.divf %3, %4 : vector<2x1024xf32>
    %c0_1 = arith.constant 0 : index
    %c0_2 = arith.constant 0 : index
    %6 = vector.load %arg2[%c0_1, %c0_2] : memref<2x1024xf32, #tpu.memory_space<vmem>>, vector<2x1024xf32>
    %7 = arith.negf %6 : vector<2x1024xf32>
    %8 = math.exp %7 : vector<2x1024xf32>
    %cst_3 = arith.constant 1.000000e+00 : f32
    %9 = vector.broadcast %cst_3 : f32 to vector<2x1024xf32>
    %10 = arith.addf %9, %8 : vector<2x1024xf32>
    %11 = arith.divf %9, %10 : vector<2x1024xf32>
    %cst_4 = arith.constant 1.000000e-07 : f32
    %12 = vector.broadcast %cst_4 : f32 to vector<2x1024xf32>
    %13 = arith.addf %5, %12 : vector<2x1024xf32>
    %14 = math.log %13 : vector<2x1024xf32>
    %15 = arith.mulf %11, %14 : vector<2x1024xf32>
    %cst_5 = arith.constant 1.000000e+00 : f32
    %16 = vector.broadcast %cst_5 : f32 to vector<2x1024xf32>
    %17 = arith.subf %16, %11 : vector<2x1024xf32>
    %cst_6 = arith.constant 1.000000e+00 : f32
    %18 = vector.broadcast %cst_6 : f32 to vector<2x1024xf32>
    %19 = arith.subf %18, %5 : vector<2x1024xf32>
    %cst_7 = arith.constant 1.000000e-07 : f32
    %20 = vector.broadcast %cst_7 : f32 to vector<2x1024xf32>
    %21 = arith.addf %19, %20 : vector<2x1024xf32>
    %22 = math.log %21 : vector<2x1024xf32>
    %23 = arith.mulf %17, %22 : vector<2x1024xf32>
    %24 = arith.addf %15, %23 : vector<2x1024xf32>
    %cst_8 = arith.constant 0.000000e+00 : f32
    %25 = vector.broadcast %cst_8 : f32 to vector<2x1024xf32>
    %26 = arith.subf %25, %24 : vector<2x1024xf32>
    %c0_9 = arith.constant 0 : index
    %c0_10 = arith.constant 0 : index
    %27 = vector.load %arg3[%c0_9, %c0_10] : memref<2x1024xf32, #tpu.memory_space<vmem>>, vector<2x1024xf32>
    tpu.vector_store %arg3[%c0_9, %c0_10], %26 {strides = array<i32>} : memref<2x1024xf32, #tpu.memory_space<vmem>>, vector<2x1024xf32>,
    return
  }
  func.func @transform_0(%arg0: i32) -> (i32, i32) {
    %c0_i32 = arith.constant 0 : i32
    %c0_i32_0 = arith.constant 0 : i32
    return %arg0, %c0_i32 : i32, i32
  }
  func.func @transform_1(%arg0: i32) -> (i32, i32) {
    %c0_i32 = arith.constant 0 : i32
    %c0_i32_0 = arith.constant 0 : i32
    return %arg0, %c0_i32 : i32, i32
  }
  func.func @transform_2(%arg0: i32) -> (i32, i32) {
    %c0_i32 = arith.constant 0 : i32
    %c0_i32_0 = arith.constant 0 : i32
    return %arg0, %c0_i32 : i32, i32
  }
}

</mosaic_0001>

<bundles_post_ra>
// kernel: tpu_custom_call.1
= control target key start
LH: loop header
LB: loop body
LE: loop exit
PB: predicated region body
PF: predicated region fallthrough
CT: control target
= control target key end

     0   :  { %7 = vsyncpa [#allocation3], 0  ;;  %s230_s0 = inlined_call_operand.hbm [shape: f32[2,1024], index: 0, kind: input, shape index: {}]   ;;  %s231_s1 = inlined_call_operand.hbm [shape: f32[2,1024], index: 1, kind: input, shape index: {}]   ;;  %s232_s2 = inlined_call_operand.hbm [shape: f32[2,1024], index: 2, kind: output, shape index: {}]  }
   0x1   :  { %8 = vsyncpa [#allocation6], 0 }
   0x2   :  { %9 = vsyncpa [#allocation4], 0  ;;  %s203_s9 = smov [#allocation2]   ;;  %s204_s11 = smov [#allocation5]  }
   0x3   :  { %s16_s10 = sshll.u32 %s203_s9, 4  ;;  %s26_s12 = sshll.u32 %s204_s11, 4  ;;  %s17_s10 = int_to_ptr.vmem [resolvable:$true] %s16_s10  ;;  %s27_s12 = int_to_ptr.vmem [resolvable:$true] %s26_s12 }
   0x4   :  { %s145_s13 = scalar_lea.vmem %s17_s10, 256  ;;  %p150_p1 = scmp.lt.s32.totalorder %s17_s10, %s17_s10 }
   0x5   :  { %p146_p0 = scmp.ne.s32.totalorder %s17_s10, %s145_s13  ;;  %p151_p2 = scmp.lt.s32.totalorder %s145_s13, %s145_s13 }
   0x7   :  { %p152_p3 = por %p151_p2, %p150_p1 }
   0x9   :  { %p153_p4 = pnand %p152_p3, %p146_p0 }
   0xb   :  { %156 = shalt.err (!%p153_p4)
}
   0xc   :  { %19 = dma.hbm_to_vmem [thread:$0]  %s230_s0, 256, %s17_s10, [#allocation3]  }
   0xd   :  { %s165_s16 = scalar_lea.vmem %s27_s12, 256  ;;  %p170_p6 = scmp.lt.s32.totalorder %s27_s12, %s27_s12 }
   0xe   :  { %p166_p5 = scmp.ne.s32.totalorder %s27_s12, %s165_s16  ;;  %p171_p7 = scmp.lt.s32.totalorder %s165_s16, %s165_s16 }
  0x10   :  { %p172_p8 = por %p171_p7, %p170_p6 }
  0x12   :  { %p173_p9 = pnand %p172_p8, %p166_p5 }
  0x14   :  { %176 = shalt.err (!%p173_p9)
}
  0x15   :  { %29 = dma.hbm_to_vmem [thread:$0]  %s231_s1, 256, %s27_s12, [#allocation6]  }
  0x16   :  { %197 = dma.done.wait [#allocation3], 256  }
  0x17   :  { %198 = vsyncadd [#allocation3], 4294967040 }
  0x18   :  { %199 = dma.done.wait [#allocation6], 256  }
  0x19   :  { %200 = vsyncadd [#allocation6], 4294967040  ;;  %v36_v0 = vld [vmem:[#allocation2] sm:$0xff]  ;;  %v37_v1 = vld [vmem:[#allocation2 + $0x8] sm:$0xff]  ;;  %s205_s0 = smov [#allocation7]  }
  0x1a   :  { %v106_v2 = vmul.f32 -1.442695, %v36_v0  ;;  %v107_v3 = vmul.f32 -1.442695, %v37_v1  ;;  %v50_v4 = vld [vmem:[#allocation5] sm:$0xff]  ;;  %v51_v5 = vld [vmem:[#allocation5 + $0x8] sm:$0xff] }
  0x1b   :  { %v108_v6 = vmul.f32 -1.442695, %v50_v4  ;;  %v109_v7 = vmul.f32 -1.442695, %v51_v5  ;;  %s96_s1 = sshll.u32 %s205_s0, 4  ;;  %s97_s1 = int_to_ptr.vmem [resolvable:$true] %s96_s1 }
  0x1c   :  { %113 = vpow2.f32 %v106_v2  ;;  %s177_s19 = scalar_lea.vmem %s97_s1, 256  ;;  %p182_p11 = scmp.lt.s32.totalorder %s97_s1, %s97_s1 }
  0x1d   :  { %115 = vpow2.f32 %v107_v3  ;;  %p178_p10 = scmp.ne.s32.totalorder %s97_s1, %s177_s19  ;;  %p183_p12 = scmp.lt.s32.totalorder %s177_s19, %s177_s19 }
  0x1e   :  { %117 = vpow2.f32 %v108_v6 }
  0x1f   :  { %119 = vpow2.f32 %v109_v7  ;;  %p184_p13 = por %p183_p12, %p182_p11 }
  0x21   :  { %p185_p0 = pnand %p184_p13, %p178_p10 }
  0x29   :  { %v114_v8 = vpop.eup %113 }
  0x2a   :  { %v44_v9 = vadd.f32 1.0, %v114_v8  ;;  %v116_v10 = vpop.eup %115 }
  0x2b   :  { %v45_v11 = vadd.f32 1.0, %v116_v10  ;;  %v118_v12 = vpop.eup %117 }
  0x2c   :  { %121 = vrcp.f32 %v44_v9  ;;  %v120_v13 = vpop.eup %119  ;;  %v58_v14 = vadd.f32 1.0, %v118_v12 }
  0x2d   :  { %123 = vrcp.f32 %v45_v11  ;;  %v59_v15 = vadd.f32 1.0, %v120_v13 }
  0x2e   :  { %125 = vrcp.f32 %v58_v14 }
  0x2f   :  { %127 = vrcp.f32 %v59_v15 }
  0x39   :  { %v122_v16 = vpop.eup %121 }
  0x3a   :  { %v64_v17 = vadd.f32 1e-07, %v122_v16  ;;  %v74_v18 = vsub.f32 1.0, %v122_v16  ;;  %v124_v19 = vpop.eup %123 }
  0x3b   :  { %v65_v21 = vadd.f32 1e-07, %v124_v19  ;;  %v75_v22 = vsub.f32 1.0, %v124_v19  ;;  %v126_v24 = vpop.eup %125 }
  0x3c   :  { %129 = vlog2.f32 %v64_v17  ;;  %v76_v20 = vadd.f32 1e-07, %v74_v18  ;;  %v128_v25 = vpop.eup %127  ;;  %v72_v28 = vsub.f32 1.0, %v126_v24 }
  0x3d   :  { %v77_v23 = vadd.f32 1e-07, %v75_v22  ;;  %v73_v33 = vsub.f32 1.0, %v128_v25 }
  0x3e   :  { %131 = vlog2.f32 %v76_v20 }
  0x3f   :  { %133 = vlog2.f32 %v65_v21 }
  0x40   :  { %135 = vlog2.f32 %v77_v23 }
  0x49   :  { %v130_v26 = vpop.eup %129 }
  0x4a   :  { %v67_v27 = vmul.f32 0.6931472, %v130_v26 }
  0x4b   :  { %v132_v29 = vpop.eup %131 }
  0x4c   :  { %v134_v30 = vpop.eup %133  ;;  %v70_v31 = vmul.f32 %v126_v24, %v67_v27  ;;  %v79_v32 = vmul.f32 0.6931472, %v132_v29 }
  0x4d   :  { %v136_v34 = vpop.eup %135  ;;  %v69_v35 = vmul.f32 0.6931472, %v134_v30 }
  0x4e   :  { %v82_v36 = vmul.f32 %v79_v32, %v72_v28  ;;  %v81_v37 = vmul.f32 0.6931472, %v136_v34 }
  0x4f   :  { %v71_v38 = vmul.f32 %v128_v25, %v69_v35 }
  0x50   :  { %v84_v39 = vadd.f32 %v82_v36, %v70_v31  ;;  %v83_v40 = vmul.f32 %v81_v37, %v73_v33 }
  0x52   :  { %v86_v41 = vsub.f32 0.0, %v84_v39  ;;  %v85_v42 = vadd.f32 %v83_v40, %v71_v38 }
  0x54   :  { %88 = vst [vmem:[#allocation7] sm:$0xff] %v86_v41  ;;  %v87_v43 = vsub.f32 0.0, %v85_v42 }
  0x56   :  { %89 = vst [vmem:[#allocation7 + $0x8] sm:$0xff] %v87_v43 }
  0x57   :  { %188 = shalt.err (!%p185_p0)
}
  0x58   :  { %99 = dma.vmem_to_hbm [thread:$0]  %s97_s1, 256, %s232_s2, [#allocation4]  }
  0x59   :  { %201 = dma.done.wait [#allocation4], 256  }
  0x5a   :  { %202 = vsyncadd [#allocation4], 4294967040 }
  0x5b   :  { %103 = vsyncpa [#allocation3], 1 }
  0x5c   :  { %104 = vsyncpa [#allocation6], 1 }
  0x5d   :  { %105 = vsyncpa [#allocation4], 1 }

</bundles_post_ra>
